<compile_context>
chip_gen: v6e
topology: v6e:2x2x1
jax: 0.10.0
libtpu: 0.0.40
codegen_flags: <defaults>
</compile_context>

<pallas_src>
import functools
import math

import jax
import jax.numpy as jnp
from jax.experimental import pallas as pl
from jax.experimental.pallas import tpu as pltpu


# --------------------------------------------------------------------------- #
# Kernel
# --------------------------------------------------------------------------- #
def _scale_kernel(x_ref, mean_ref, inv_scale_ref, o_ref):
    # Pure VPU sub+mul on a (row_tile, W) tile; mean/inv_scale are (1, W) and
    # broadcast across rows.  Reciprocal is precomputed in the wrapper.
    o_ref[...] = ((x_ref[...] - mean_ref[...]) * inv_scale_ref[...]).astype(o_ref.dtype)


# --------------------------------------------------------------------------- #
# VMEM / tile sizing
# --------------------------------------------------------------------------- #
def _scoped_vmem_limit_bytes() -> int:
    """Per-generation scoped-VMEM request (v7x: 64 MiB physical; v5e/v6e: 128 MiB)."""
    try:
        phys = int(pltpu.get_tpu_info().vmem_capacity_bytes)
    except Exception:  # pragma: no cover - be conservative if query unavailable
        phys = 64 * 1024 * 1024
    return int(min(phys // 4, 32 * 1024 * 1024))


def _pick_row_tile(n_rows: int, width: int, itemsize: int,
                   vmem_budget_bytes: int, max_rows: int = 1024) -> int:
    """Rows per block using the *lane-padded* VMEM footprint.

    Input and output blocks are each double-buffered by the pipeline, so ~4
    blocks of (row_tile, round_up(width, 128)) are resident at once.  Tiles
    are capped at `max_rows` (HBM roofline saturates by ~512-1024 rows; larger
    tiles just expose pipeline fill/drain and burn VMEM).
    """
    lane_width = -(-width // 128) * 128            # round_up(width, 128)
    bytes_per_row = 4 * lane_width * itemsize      # in + out, double-buffered
    fits = max(8, vmem_budget_bytes // bytes_per_row)
    tile = min(n_rows, fits, max_rows)
    if tile < n_rows:
        tile = max(8, (tile // 8) * 8)             # multiple of 8 sublanes
    return tile


# --------------------------------------------------------------------------- #
# Pallas wrapper
# --------------------------------------------------------------------------- #
def _scale_pallas(x, mean, inv_scale, row_tile=None, donate_input=False):
    """Runs the kernel on an (n, W) slab whose W is a multiple of 128."""
    n, w = x.shape
    scoped = _scoped_vmem_limit_bytes()
    if row_tile is None:
        row_tile = _pick_row_tile(n, w, x.dtype.itemsize, (scoped * 3) // 4)
    row_tile = min(row_tile, n)
    if row_tile < n and row_tile % 8:
        row_tile = max(8, (row_tile // 8) * 8)
    grid = (pl.cdiv(n, row_tile),)

    return pl.pallas_call(
        _scale_kernel,
        out_shape=jax.ShapeDtypeStruct((n, w), x.dtype),
        grid=grid,
        in_specs=[
            # NOTE: the ragged tail block reads padded (out-of-bounds) rows of x;
            # results for those rows are discarded by masked writes.  Fine for a
            # pure elementwise op -- do NOT add reductions over the tile.
            pl.BlockSpec((row_tile, w), lambda i: (i, 0)),
            pl.BlockSpec((1, w), lambda i: (0, 0)),
            pl.BlockSpec((1, w), lambda i: (0, 0)),
        ],
        out_specs=pl.BlockSpec((row_tile, w), lambda i: (i, 0)),
        input_output_aliases=({0: 0} if donate_input else {}),
        compiler_params=pltpu.CompilerParams(
            dimension_semantics=("parallel",),
            vmem_limit_bytes=scoped,
        ),
    )(x, mean, inv_scale)


def scale_transform(x: jax.Array, mean: jax.Array, inv_scale: jax.Array,
                    *, row_tile: int | None = None,
                    donate_input: bool = False) -> jax.Array:
    """Eval-mode ScaleTransform.forward: (x - mean) * inv_scale, row-broadcast.

    `inv_scale` must be the precomputed reciprocal of the `scale` buffer.
    """
    n, d = x.shape
    assert mean.shape == (1, d) and inv_scale.shape == (1, d)
    if n == 0:
        return x

    # Lane-densify: view (n, d) as (n//k, k*d) so the last dim is a multiple of
    # 128 -> full-width DMAs and unmasked stores at identical HBM byte count.
    k = 1 if d % 128 == 0 else 128 // math.gcd(d, 128)

    if k == 1:
        return _scale_pallas(x, mean, inv_scale, row_tile, donate_input)

    if n < k:
        # Too few rows to form even one lane-dense row; XLA handles it.
        return ((x - mean) * inv_scale).astype(x.dtype)

    n_main = (n // k) * k
    w = k * d
    mean_w = jnp.tile(mean, (1, k))          # tiny (1, k*d) buffers
    inv_w = jnp.tile(inv_scale, (1, k))

    x_main = x[:n_main].reshape(n_main // k, w)   # pure bitcast when n_main == n
    out_main = _scale_pallas(x_main, mean_w, inv_w, row_tile,
                             donate_input and n_main == n)
    out_main = out_main.reshape(n_main, d)

    if n_main == n:
        return out_main
    # Remainder rows (< k of them) via the XLA path, same formula.
    tail = ((x[n_main:] - mean) * inv_scale).astype(x.dtype)
    return jnp.concatenate([out_main, tail], axis=0)


# --------------------------------------------------------------------------- #
# Module-level wrappers (mirror of the PyTorch classes)
# --------------------------------------------------------------------------- #
def make_scale_buffers(mean_vec: jax.Array, scale_vec: jax.Array, pad: int = 0):
    """Mirror of _ScaleTransformMixin.__init__ buffer construction."""
    mean = jnp.concatenate([jnp.zeros((pad,), jnp.float32),
                            mean_vec.astype(jnp.float32)])
    scale = jnp.concatenate([jnp.ones((pad,), jnp.float32),
                             scale_vec.astype(jnp.float32)])
    if mean.shape != scale.shape:
        raise ValueError("uneven shapes for 'mean' and 'scale'")
    return mean[None, :], scale[None, :]   # (1, d), like .unsqueeze(0)


def graph_transform(V, E, V_mean, V_scale, E_mean, E_scale,
                    *, training: bool = False,
                    min_pallas_bytes: int = 1 << 20):
    """GraphTransform.forward: transform bmg.V and bmg.E (identity in training)."""
    if training:
        return V, E

    def _apply(x, mean, scale):
        inv_scale = 1.0 / scale                      # one-time (1, d) reciprocal
        if x.size * x.dtype.itemsize < min_pallas_bytes:
            # Small tensors: a pallas_call launch costs microseconds; let XLA
            # fuse the (identical) elementwise expression instead.
            return ((x - mean) * inv_scale).astype(x.dtype)
        return scale_transform(x, mean, inv_scale)

    return _apply(V, V_mean, V_scale), _apply(E, E_mean, E_scale)


# --------------------------------------------------------------------------- #
# Demo / self-test
# --------------------------------------------------------------------------- #
if __name__ == "__main__":
    key = jax.random.PRNGKey(0)
    ks = jax.random.split(key, 8)

    # Small synthetic BatchMolGraph-like tensors.
    #   V: (32, 72)  -> k = 128/gcd(72,128) = 16, 32 % 16 == 0 (fully lane-dense)
    #   E: (64, 14)  -> k = 128/gcd(14,128) = 64, 64 % 64 == 0 (fully lane-dense)
    n_atoms, d_v_stats, v_pad = 32, 64, 8
    n_edges, d_e_stats, e_pad = 64, 12, 2

    V = jax.random.normal(ks[0], (n_atoms, v_pad + d_v_stats), jnp.float32)
    E = jax.random.normal(ks[1], (n_edges, e_pad + d_e_stats), jnp.float32)

    V_mean_vec = jax.random.normal(ks[2], (d_v_stats,), jnp.float32)
    V_scale_vec = jax.random.uniform(ks[3], (d_v_stats,), jnp.float32, 0.5, 2.0)
    E_mean_vec = jax.random.normal(ks[4], (d_e_stats,), jnp.float32)
    E_scale_vec = jax.random.uniform(ks[5], (d_e_stats,), jnp.float32, 0.5, 2.0)

    V_mean, V_scale = make_scale_buffers(V_mean_vec, V_scale_vec, pad=v_pad)
    E_mean, E_scale = make_scale_buffers(E_mean_vec, E_scale_vec, pad=e_pad)

    # --- 1) force the Pallas path on the small example graph ----------------
    fwd = jax.jit(functools.partial(graph_transform, training=False,
                                    min_pallas_bytes=0))
    V_out, E_out = fwd(V, E, V_mean, V_scale, E_mean, E_scale)
    jax.block_until_ready((V_out, E_out))

    V_ref = (V - V_mean) / V_scale
    E_ref = (E - E_mean) / E_scale
    assert V_out.shape == V.shape and E_out.shape == E.shape
    assert jnp.allclose(V_out, V_ref, atol=1e-5, rtol=1e-5)
    assert jnp.allclose(E_out, E_ref, atol=1e-5, rtol=1e-5)

    # --- 2) training mode is the identity -----------------------------------
    V_id, E_id = graph_transform(V, E, V_mean, V_scale, E_mean, E_scale,
                                 training=True)
    assert V_id is V and E_id is E

    # --- 3) multi-step grid + ragged rows (1000 = 62*16 + 8 tail) -----------
    n_big = 1000
    V_big = jax.random.normal(ks[6], (n_big, v_pad + d_v_stats), jnp.float32)
    V_inv = 1.0 / V_scale
    V_big_out = jax.jit(functools.partial(scale_transform, row_tile=32))(
        V_big, V_mean, V_inv)
    jax.block_until_ready(V_big_out)
    assert jnp.allclose(V_big_out, (V_big - V_mean) * V_inv, atol=1e-5, rtol=1e-5)

    # --- 4) d already a multiple of 128 (no reshape needed) -----------------
    Xw = jax.random.normal(ks[7], (64, 128), jnp.float32)
    m128 = jnp.zeros((1, 128), jnp.float32)
    s128 = jnp.full((1, 128), 2.0, jnp.float32)
    out128 = jax.jit(scale_transform)(Xw, m128, 1.0 / s128)
    jax.block_until_ready(out128)
    assert jnp.allclose(out128, (Xw - m128) / s128, atol=1e-5, rtol=1e-5)

    # --- 5) n < k tiny-tensor fallback inside scale_transform ---------------
    tiny = E[:4]
    tiny_out = jax.jit(scale_transform)(tiny, E_mean, 1.0 / E_scale)
    jax.block_until_ready(tiny_out)
    assert jnp.allclose(tiny_out, (tiny - E_mean) / E_scale, atol=1e-5, rtol=1e-5)

    print("KERNEL_OK")
</pallas_src>

<mosaic_0001>
module attributes {stable_mosaic.version = 11 : i64} {
  func.func @_scale_kernel(%arg0: i32, %arg1: memref<1x896xf32, #tpu.memory_space<vmem>>, %arg2: memref<1x896xf32, #tpu.memory_space<vmem>>, %arg3: memref<1x896xf32, #tpu.memory_space<vmem>>, %arg4: memref<1x896xf32, #tpu.memory_space<vmem>>) attributes {dimension_semantics = [#tpu.dimension_semantics<parallel>], iteration_bounds = array<i64: 1>, scalar_prefetch = 0 : i64, scratch_operands = 0 : i64, tpu.core_type = #tpu.core_type<tc>, window_params = [{transform_indices = @transform_0, window_bounds = array<i64: 1, 896>}, {pipeline_mode = #tpu.pipeline_mode<synchronous>, transform_indices = @transform_1, window_bounds = array<i64: 1, 896>}, {pipeline_mode = #tpu.pipeline_mode<synchronous>, transform_indices = @transform_2, window_bounds = array<i64: 1, 896>}, {transform_indices = @transform_3, window_bounds = array<i64: 1, 896>}]} {
    %c0 = arith.constant 0 : index
    %c0_0 = arith.constant 0 : index
    %0 = vector.load %arg1[%c0, %c0_0] : memref<1x896xf32, #tpu.memory_space<vmem>>, vector<1x896xf32>
    %c0_1 = arith.constant 0 : index
    %c0_2 = arith.constant 0 : index
    %1 = vector.load %arg2[%c0_1, %c0_2] : memref<1x896xf32, #tpu.memory_space<vmem>>, vector<1x896xf32>
    %2 = arith.subf %0, %1 : vector<1x896xf32>
    %c0_3 = arith.constant 0 : index
    %c0_4 = arith.constant 0 : index
    %3 = vector.load %arg3[%c0_3, %c0_4] : memref<1x896xf32, #tpu.memory_space<vmem>>, vector<1x896xf32>
    %4 = arith.mulf %2, %3 : vector<1x896xf32>
    %c0_5 = arith.constant 0 : index
    %c0_6 = arith.constant 0 : index
    %5 = vector.load %arg4[%c0_5, %c0_6] : memref<1x896xf32, #tpu.memory_space<vmem>>, vector<1x896xf32>
    tpu.vector_store %arg4[%c0_5, %c0_6], %4 {strides = array<i32>} : memref<1x896xf32, #tpu.memory_space<vmem>>, vector<1x896xf32>,
    return
  }
  func.func @transform_0(%arg0: i32) -> (i32, i32) {
    %c0_i32 = arith.constant 0 : i32
    %c0_i32_0 = arith.constant 0 : i32
    return %arg0, %c0_i32 : i32, i32
  }
  func.func @transform_1(%arg0: i32) -> (i32, i32) {
    %c0_i32 = arith.constant 0 : i32
    %c0_i32_0 = arith.constant 0 : i32
    %c0_i32_1 = arith.constant 0 : i32
    return %c0_i32, %c0_i32_0 : i32, i32
  }
  func.func @transform_2(%arg0: i32) -> (i32, i32) {
    %c0_i32 = arith.constant 0 : i32
    %c0_i32_0 = arith.constant 0 : i32
    %c0_i32_1 = arith.constant 0 : i32
    return %c0_i32, %c0_i32_0 : i32, i32
  }
  func.func @transform_3(%arg0: i32) -> (i32, i32) {
    %c0_i32 = arith.constant 0 : i32
    %c0_i32_0 = arith.constant 0 : i32
    return %arg0, %c0_i32 : i32, i32
  }
}

module attributes {stable_mosaic.version = 11 : i64} {
  func.func @_scale_kernel(%arg0: i32, %arg1: memref<2x1152xf32, #tpu.memory_space<vmem>>, %arg2: memref<1x1152xf32, #tpu.memory_space<vmem>>, %arg3: memref<1x1152xf32, #tpu.memory_space<vmem>>, %arg4: memref<2x1152xf32, #tpu.memory_space<vmem>>) attributes {dimension_semantics = [#tpu.dimension_semantics<parallel>], iteration_bounds = array<i64: 1>, scalar_prefetch = 0 : i64, scratch_operands = 0 : i64, tpu.core_type = #tpu.core_type<tc>, window_params = [{transform_indices = @transform_0, window_bounds = array<i64: 2, 1152>}, {pipeline_mode = #tpu.pipeline_mode<synchronous>, transform_indices = @transform_1, window_bounds = array<i64: 1, 1152>}, {pipeline_mode = #tpu.pipeline_mode<synchronous>, transform_indices = @transform_2, window_bounds = array<i64: 1, 1152>}, {transform_indices = @transform_3, window_bounds = array<i64: 2, 1152>}]} {
    %c0 = arith.constant 0 : index
    %c0_0 = arith.constant 0 : index
    %0 = vector.load %arg1[%c0, %c0_0] : memref<2x1152xf32, #tpu.memory_space<vmem>>, vector<2x1152xf32>
    %c0_1 = arith.constant 0 : index
    %c0_2 = arith.constant 0 : index
    %1 = vector.load %arg2[%c0_1, %c0_2] : memref<1x1152xf32, #tpu.memory_space<vmem>>, vector<1x1152xf32>
    %2 = vector.broadcast %1 : vector<1x1152xf32> to vector<2x1152xf32>
    %3 = arith.subf %0, %2 : vector<2x1152xf32>
    %c0_3 = arith.constant 0 : index
    %c0_4 = arith.constant 0 : index
    %4 = vector.load %arg3[%c0_3, %c0_4] : memref<1x1152xf32, #tpu.memory_space<vmem>>, vector<1x1152xf32>
    %5 = vector.broadcast %4 : vector<1x1152xf32> to vector<2x1152xf32>
    %6 = arith.mulf %3, %5 : vector<2x1152xf32>
    %c0_5 = arith.constant 0 : index
    %c0_6 = arith.constant 0 : index
    %7 = vector.load %arg4[%c0_5, %c0_6] : memref<2x1152xf32, #tpu.memory_space<vmem>>, vector<2x1152xf32>
    tpu.vector_store %arg4[%c0_5, %c0_6], %6 {strides = array<i32>} : memref<2x1152xf32, #tpu.memory_space<vmem>>, vector<2x1152xf32>,
    return
  }
  func.func @transform_0(%arg0: i32) -> (i32, i32) {
    %c0_i32 = arith.constant 0 : i32
    %c0_i32_0 = arith.constant 0 : i32
    return %arg0, %c0_i32 : i32, i32
  }
  func.func @transform_1(%arg0: i32) -> (i32, i32) {
    %c0_i32 = arith.constant 0 : i32
    %c0_i32_0 = arith.constant 0 : i32
    %c0_i32_1 = arith.constant 0 : i32
    return %c0_i32, %c0_i32_0 : i32, i32
  }
  func.func @transform_2(%arg0: i32) -> (i32, i32) {
    %c0_i32 = arith.constant 0 : i32
    %c0_i32_0 = arith.constant 0 : i32
    %c0_i32_1 = arith.constant 0 : i32
    return %c0_i32, %c0_i32_0 : i32, i32
  }
  func.func @transform_3(%arg0: i32) -> (i32, i32) {
    %c0_i32 = arith.constant 0 : i32
    %c0_i32_0 = arith.constant 0 : i32
    return %arg0, %c0_i32 : i32, i32
  }
}

</mosaic_0001>

<bundles_post_ra>
// kernel: graph_transform.2
= control target key start
LH: loop header
LB: loop body
LE: loop exit
PB: predicated region body
PF: predicated region fallthrough
CT: control target
= control target key end

     0   :  { %v21_v0 = vlaneseq  ;;  %v201_v1 = vmov 1983009808   ;;  %s252_s1 = inlined_call_operand.vmem [shape: f32[1,1152], index: 1, kind: input, shape index: {}]   ;;  %s253_s2 = inlined_call_operand.vmem [shape: f32[1,1152], index: 2, kind: input, shape index: {}]   ;;  %s254_s0 = inlined_call_operand.vmem [shape: f32[2,1152], index: 0, kind: input, shape index: {}]   ;;  %s255_s3 = inlined_call_operand.vmem [shape: f32[2,1152], index: 3, kind: output, shape index: {}]  }
   0x1   :  { %v60_v2 = vunpack.c.l.s4 %v201_v1  ;;  %v17_v4 = vld [vmem:[%s252_s1] sm:$0xff]  ;;  %v198_v35 = vld [vmem:[%s252_s1 + $0x8] ss:$0 sm:$0xff]  ;;  %v16_v46 = vld [vmem:[%s254_s0 + $0x10] sm:$0x3] }
   0x2   :  { %v22_v3 = vshrl.u32 %v21_v0, 7  ;;  %v104_v10 = vld [vmem:[%s253_s2] sm:$0xff]  ;;  %v199_v41 = vld [vmem:[%s253_s2 + $0x8] ss:$0 sm:$0xff] }
   0x3   :  { %v61_v5 = vunpack.c.0.s8 %v60_v2  ;;  %v14_v36 = vld [vmem:[%s254_s0] sm:$0xff]  ;;  %v15_v58 = vld [vmem:[%s254_s0 + $0x8] sm:$0xff] }
   0x4   :  { %v23_v6 = vsub.s32 0, %v22_v3  ;;  %v27_v7 = vsub.s32 1, %v22_v3  ;;  %v31_v8 = vsub.s32 2, %v22_v3  ;;  %v35_v9 = vsub.s32 3, %v22_v3 }
   0x5   :  { %v64_v11 = vsub.s32 %v61_v5, %v22_v3  ;;  %v39_v12 = vsub.s32 4, %v22_v3  ;;  %v43_v13 = vsub.s32 5, %v22_v3  ;;  %v47_v14 = vsub.s32 6, %v22_v3 }
   0x6   :  { %v24_v15 = vrot.slane %v17_v4, %v23_v6  ;;  %v28_v16 = vrot.slane %v17_v4, %v27_v7  ;;  %v32_v17 = vrot.slane %v17_v4, %v31_v8  ;;  %v36_v18 = vrot.slane %v17_v4, %v35_v9 }
   0x7   :  { %v111_v19 = vrot.slane %v104_v10, %v23_v6  ;;  %v115_v20 = vrot.slane %v104_v10, %v27_v7  ;;  %v119_v21 = vrot.slane %v104_v10, %v31_v8  ;;  %v123_v22 = vrot.slane %v104_v10, %v35_v9 }
   0x8   :  { %v57_v23 = vcombine.low %v24_v15, %v28_v16  ;;  %v58_v24 = vcombine.low %v32_v17, %v36_v18  ;;  %v40_v25 = vrot.slane %v17_v4, %v39_v12  ;;  %v44_v26 = vrot.slane %v17_v4, %v43_v13 }
   0x9   :  { %v144_v27 = vcombine.low %v111_v19, %v115_v20  ;;  %v145_v28 = vcombine.low %v119_v21, %v123_v22  ;;  %v48_v29 = vrot.slane %v17_v4, %v47_v14  ;;  %v51_v30 = vsub.s32 7, %v22_v3 }
   0xa   :  { %v65_v31 = vrot.slane %v57_v23, %v64_v11  ;;  %v72_v32 = vrot.slane %v58_v24, %v64_v11  ;;  %v74_v33 = vcombine.low %v40_v25, %v44_v26  ;;  %v127_v34 = vrot.slane %v104_v10, %v39_v12 }
   0xb   :  { %v152_v37 = vrot.slane %v144_v27, %v64_v11  ;;  %v159_v38 = vrot.slane %v145_v28, %v64_v11  ;;  %v52_v39 = vrot.slane %v17_v4, %v51_v30  ;;  %v131_v40 = vrot.slane %v104_v10, %v43_v13 }
   0xc   :  { %v73_v42 = vcombine.low %v65_v31, %v72_v32  ;;  %v82_v43 = vrot.slane %v74_v33, %v64_v11  ;;  %v135_v44 = vrot.slane %v104_v10, %v47_v14  ;;  %v139_v45 = vrot.slane %v104_v10, %v51_v30 }
   0xd   :  { %v160_v47 = vcombine.low %v152_v37, %v159_v38  ;;  %v75_v48 = vcombine.low %v48_v29, %v52_v39  ;;  %v161_v49 = vcombine.low %v127_v34, %v131_v40  ;;  %v97_v50 = vrot.slane %v198_v35, %v64_v11 }
   0xe   :  { %v101_v51 = vsub.f32 %v14_v36, %v73_v42  ;;  %v162_v52 = vcombine.low %v135_v44, %v139_v45  ;;  %v184_v53 = vrot.slane %v199_v41, %v64_v11 }
   0xf   :  { %v89_v54 = vrot.slane %v75_v48, %v64_v11  ;;  %v169_v55 = vrot.slane %v161_v49, %v64_v11  ;;  %v103_v56 = vsub.f32 %v16_v46, %v97_v50 }
  0x10   :  { %v188_v57 = vmul.f32 %v160_v47, %v101_v51  ;;  %v176_v59 = vrot.slane %v162_v52, %v64_v11 }
  0x11   :  { %v90_v60 = vcombine.low %v82_v43, %v89_v54  ;;  %v190_v61 = vmul.f32 %v184_v53, %v103_v56 }
  0x12   :  { %191 = vst [vmem:[%s255_s3] sm:$0xff] %v188_v57  ;;  %v177_v62 = vcombine.low %v169_v55, %v176_v59 }
  0x13   :  { %v102_v63 = vsub.f32 %v15_v58, %v90_v60  ;;  %193 = vst [vmem:[%s255_s3 + $0x10] sm:$0x3] %v190_v61 }
  0x15   :  { %v189_v0 = vmul.f32 %v177_v62, %v102_v63 }
  0x17   :  { %192 = vst [vmem:[%s255_s3 + $0x8] sm:$0xff] %v189_v0 }

// kernel: graph_transform.3
= control target key start
LH: loop header
LB: loop body
LE: loop exit
PB: predicated region body
PF: predicated region fallthrough
CT: control target
= control target key end

     0   :  { %v19_v0 = vlaneseq  ;;  %s60_s0 = inlined_call_operand.vmem [shape: f32[1,896], index: 0, kind: input, shape index: {}]   ;;  %s61_s1 = inlined_call_operand.vmem [shape: f32[1,896], index: 1, kind: input, shape index: {}]   ;;  %s62_s2 = inlined_call_operand.vmem [shape: f32[1,896], index: 2, kind: input, shape index: {}]   ;;  %s63_s3 = inlined_call_operand.vmem [shape: f32[1,896], index: 3, kind: output, shape index: {}]  }
   0x1   :  { %v14_v1 = vld [vmem:[%s60_s0] sm:$0xff] }
   0x2   :  { %v15_v2 = vld [vmem:[%s61_s1] sm:$0xff]  ;;  %vm21_vm0 = vcmp.lt.s32.totalorder %v19_v0, 896 }
   0x3   :  { %v17_v3 = vld [vmem:[%s62_s2] sm:$0xff]  ;;  %v16_v4 = vsub.f32 %v14_v1, %v15_v2 }
   0x5   :  { %v18_v5 = vmul.f32 %v17_v3, %v16_v4 }
   0x7   :  { %23 = vst.msk [vmem:[%s63_s3] sm:$0x7f] %vm21_vm0, %v18_v5 }

</bundles_post_ra>
